<compile_context>
chip_gen: v7x
topology: tpu7x:2x2x1
jax: 0.10.0
libtpu: 0.0.40
codegen_flags: <defaults>
</compile_context>

<pallas_src>
import numpy as np
import jax
import jax.numpy as jnp
from jax.experimental import pallas as pl
from jax.experimental.pallas import tpu as pltpu


def _round_up(a, b):
    return ((a + b - 1) // b) * b


def _pick_tile(dim, pref):
    """Use `pref` if it evenly tiles `dim`, else fall back to the full dim
    (full-extent blocks always satisfy the (8,128) tiling rule)."""
    return pref if (dim >= pref and dim % pref == 0) else dim


# ---------------------------------------------------------------------------
# Kernel 1: one-shot bit -> bf16 weight reconstruction (elementwise, K x N tiles)
# ---------------------------------------------------------------------------
def make_reconstruct_kernel(n_mag):
    def kernel(mag_ref, sign_ref, w_ref):
        # magnitude bits combined with powers of two, without an explicit 0/1
        # tensor or extra multiplies: mag += where(bit >= 0, 2^-(k+1), 0)
        mag = jnp.zeros(sign_ref.shape, jnp.float32)
        for k in range(n_mag):  # n_mag is small & static -> fully unrolled
            mag = mag + jnp.where(
                mag_ref[k] >= 0.0,
                jnp.float32(2.0 ** (-(k + 1))),
                jnp.float32(0.0),
            )
        # sign applied via select (no +/-1 tensor, no sign*mag multiply)
        w = jnp.where(sign_ref[...] >= 0.0, mag, -mag)
        # sums of 2^-(k+1) with small n_mag are exact in bf16 (alpha applied
        # later in f32 on the output tile), so no precision is lost here.
        w_ref[...] = w.astype(w_ref.dtype)

    return kernel


def reconstruct_weight(mag_bits, sign_bit, *, bk=256, bn=256):
    n_mag, K, N = mag_bits.shape
    bk = _pick_tile(K, bk)
    bn = _pick_tile(N, bn)
    return pl.pallas_call(
        make_reconstruct_kernel(n_mag),
        out_shape=jax.ShapeDtypeStruct((K, N), jnp.bfloat16),
        grid_spec=pltpu.PrefetchScalarGridSpec(
            num_scalar_prefetch=0,
            grid=(K // bk, N // bn),
            in_specs=[
                pl.BlockSpec((n_mag, bk, bn), lambda i, j: (0, i, j)),  # mag bits
                pl.BlockSpec((bk, bn), lambda i, j: (i, j)),            # sign bit
            ],
            out_specs=pl.BlockSpec((bk, bn), lambda i, j: (i, j)),
        ),
        compiler_params=pltpu.CompilerParams(
            dimension_semantics=("parallel", "parallel"),
            vmem_limit_bytes=32 * 1024 * 1024,
        ),
    )(mag_bits, sign_bit)


# ---------------------------------------------------------------------------
# Kernel 2: standard tiled bf16 matmul, f32 accumulation, alpha on output tile
# ---------------------------------------------------------------------------
def matmul_kernel(alpha_ref, x_ref, w_ref, o_ref, acc_ref):
    @pl.when(pl.program_id(2) == 0)
    def _():
        acc_ref[...] = jnp.zeros_like(acc_ref)

    acc_ref[...] += jnp.dot(
        x_ref[...], w_ref[...], preferred_element_type=jnp.float32
    )

    @pl.when(pl.program_id(2) == pl.num_programs(2) - 1)
    def _():
        o_ref[...] = (alpha_ref[0] * acc_ref[...]).astype(o_ref.dtype)


def linear_bit_forward(x, mag_bits, sign_bit, alpha, *, tm=256, tn=256, tk=512):
    """x: (..., K) f32; mag_bits: (n_mag, K, N) f32 latents;
    sign_bit: (K, N) f32 latent; alpha: (1,) f32 scalar."""
    orig_shape = x.shape
    K = orig_shape[-1]
    n_mag, Kw, N = mag_bits.shape
    assert Kw == K

    # Step 1: reconstruct the weight once (bf16, exact for power-of-two sums).
    w_bf16 = reconstruct_weight(mag_bits, sign_bit)

    # Step 2: tiled matmul.  Pad M to the row tile instead of asserting.
    x2 = x.reshape(-1, K).astype(jnp.bfloat16)
    M = x2.shape[0]
    tm = min(tm, _round_up(M, 8))
    M_pad = _round_up(M, tm)
    if M_pad != M:
        x2 = jnp.pad(x2, ((0, M_pad - M), (0, 0)))
    tn = _pick_tile(N, tn)
    tk = _pick_tile(K, tk)

    out = pl.pallas_call(
        matmul_kernel,
        out_shape=jax.ShapeDtypeStruct((M_pad, N), jnp.float32),
        grid_spec=pltpu.PrefetchScalarGridSpec(
            num_scalar_prefetch=0,
            grid=(M_pad // tm, N // tn, K // tk),
            in_specs=[
                pl.BlockSpec(memory_space=pltpu.MemorySpace.SMEM),    # alpha
                pl.BlockSpec((tm, tk), lambda i, j, k: (i, k)),       # x tile
                pl.BlockSpec((tk, tn), lambda i, j, k: (k, j)),       # W tile (bf16)
            ],
            out_specs=pl.BlockSpec((tm, tn), lambda i, j, k: (i, j)),
            scratch_shapes=[pltpu.VMEM((tm, tn), jnp.float32)],
        ),
        compiler_params=pltpu.CompilerParams(
            dimension_semantics=("parallel", "parallel", "arbitrary"),
            vmem_limit_bytes=32 * 1024 * 1024,
        ),
    )(alpha, x2, w_bf16)

    out = out[:M]
    return out.reshape(orig_shape[:-1] + (N,))


if __name__ == "__main__":
    # ----- module config (default=False branch: bit-reconstructed weights) ---
    batch, seq = 2, 8
    input_dim, output_dim = 32, 32
    config = {
        "default": False,
        "trainable_bits": [1, 1, 1, 1],          # nbBits = 4
        "inference_sequence": (0, 3),            # magnitude bits 0..2, sign bit 3
    }
    nb_bits = len(config["trainable_bits"])
    m_lo, m_hi = config["inference_sequence"]
    n_mag = m_hi - m_lo

    # ----- deterministic parameter init (stands in for init_weight_bits) -----
    key = jax.random.PRNGKey(0)
    k_bits, k_x = jax.random.split(key)
    bit_weights = jax.random.uniform(
        k_bits, (nb_bits, input_dim, output_dim), jnp.float32, -1.0, 1.0
    )
    mag_bits = bit_weights[m_lo:m_hi]            # (n_mag, K, N)
    sign_bit = bit_weights[m_hi]                 # (K, N)
    x = jax.random.normal(k_x, (batch, seq, input_dim), jnp.float32)

    # ----- glue: alpha = get_factor(W_unscaled, std) (global scalar reduce) --
    sign = jnp.where(sign_bit >= 0.0, 1.0, -1.0)
    bits01 = jnp.where(mag_bits >= 0.0, 1.0, 0.0)
    powers = 2.0 ** -(jnp.arange(1, n_mag + 1, dtype=jnp.float32))
    w_unscaled = sign * jnp.einsum("kio,k->io", bits01, powers)
    std_target = np.sqrt(2.0 / input_dim)        # self.std = sqrt(2/prod(w_shape[:-1]))
    alpha = (std_target / (jnp.std(w_unscaled) + 1e-12)).reshape(1).astype(jnp.float32)

    # ----- run Pallas kernels -------------------------------------------------
    y = linear_bit_forward(x, mag_bits, sign_bit, alpha)
    y = jax.block_until_ready(y)

    # ----- reference checks ---------------------------------------------------
    # Exact-path reference: bf16 activations (as fed to the MXU), exact bf16
    # weights (power-of-two sums), f32 accumulation, f32 alpha epilogue.
    x_bf16 = x.astype(jnp.bfloat16).astype(jnp.float32)
    y_ref = jnp.dot(
        x_bf16.reshape(-1, input_dim),
        w_unscaled,
        precision=jax.lax.Precision.HIGHEST,
    ).reshape(batch, seq, output_dim) * alpha[0]
    # Full f32 semantic reference (looser, covers the bf16 activation cast).
    y_ref_f32 = x @ (w_unscaled * alpha[0])

    assert y.shape == (batch, seq, output_dim)
    assert jnp.allclose(y, y_ref, atol=1e-4, rtol=1e-4), "mismatch vs bf16 reference"
    assert jnp.allclose(y, y_ref_f32, atol=5e-2, rtol=5e-2), "mismatch vs f32 reference"

    print("KERNEL_OK")
</pallas_src>

<mosaic_0001>
module attributes {stable_mosaic.version = 11 : i64} {
  func.func @kernel(%arg0: i32, %arg1: i32, %arg2: memref<3x32x32xf32, #tpu.memory_space<vmem>>, %arg3: memref<32x32xf32, #tpu.memory_space<vmem>>, %arg4: memref<32x32xbf16, #tpu.memory_space<vmem>>) attributes {dimension_semantics = [#tpu.dimension_semantics<parallel>, #tpu.dimension_semantics<parallel>], iteration_bounds = array<i64: 1, 1>, scalar_prefetch = 0 : i64, scratch_operands = 0 : i64, tpu.core_type = #tpu.core_type<tc>, window_params = [{transform_indices = @transform_0, window_bounds = array<i64: 3, 32, 32>}, {transform_indices = @transform_1, window_bounds = array<i64: 32, 32>}, {transform_indices = @transform_2, window_bounds = array<i64: 32, 32>}]} {
    %cst = arith.constant 0.000000e+00 : f32
    %0 = vector.broadcast %cst : f32 to vector<32x32xf32>
    %c0 = arith.constant 0 : index
    %c0_0 = arith.constant 0 : index
    %c0_1 = arith.constant 0 : index
    %1 = vector.load %arg2[%c0, %c0_0, %c0_1] : memref<3x32x32xf32, #tpu.memory_space<vmem>>, vector<1x32x32xf32>
    %2 = vector.shape_cast %1 : vector<1x32x32xf32> to vector<32x32xf32>
    %cst_2 = arith.constant 0.000000e+00 : f32
    %3 = vector.broadcast %cst_2 : f32 to vector<32x32xf32>
    %4 = arith.cmpf oge, %2, %3 : vector<32x32xf32>
    %cst_3 = arith.constant 5.000000e-01 : f32
    %cst_4 = arith.constant 0.000000e+00 : f32
    %5 = vector.broadcast %cst_3 : f32 to vector<32x32xf32>
    %6 = vector.broadcast %cst_4 : f32 to vector<32x32xf32>
    %7 = arith.select %4, %5, %6 : vector<32x32xi1>, vector<32x32xf32>
    %8 = arith.addf %0, %7 : vector<32x32xf32>
    %c1 = arith.constant 1 : index
    %c0_5 = arith.constant 0 : index
    %c0_6 = arith.constant 0 : index
    %9 = vector.load %arg2[%c1, %c0_5, %c0_6] : memref<3x32x32xf32, #tpu.memory_space<vmem>>, vector<1x32x32xf32>
    %10 = vector.shape_cast %9 : vector<1x32x32xf32> to vector<32x32xf32>
    %cst_7 = arith.constant 0.000000e+00 : f32
    %11 = vector.broadcast %cst_7 : f32 to vector<32x32xf32>
    %12 = arith.cmpf oge, %10, %11 : vector<32x32xf32>
    %cst_8 = arith.constant 2.500000e-01 : f32
    %cst_9 = arith.constant 0.000000e+00 : f32
    %13 = vector.broadcast %cst_8 : f32 to vector<32x32xf32>
    %14 = vector.broadcast %cst_9 : f32 to vector<32x32xf32>
    %15 = arith.select %12, %13, %14 : vector<32x32xi1>, vector<32x32xf32>
    %16 = arith.addf %8, %15 : vector<32x32xf32>
    %c2 = arith.constant 2 : index
    %c0_10 = arith.constant 0 : index
    %c0_11 = arith.constant 0 : index
    %17 = vector.load %arg2[%c2, %c0_10, %c0_11] : memref<3x32x32xf32, #tpu.memory_space<vmem>>, vector<1x32x32xf32>
    %18 = vector.shape_cast %17 : vector<1x32x32xf32> to vector<32x32xf32>
    %cst_12 = arith.constant 0.000000e+00 : f32
    %19 = vector.broadcast %cst_12 : f32 to vector<32x32xf32>
    %20 = arith.cmpf oge, %18, %19 : vector<32x32xf32>
    %cst_13 = arith.constant 1.250000e-01 : f32
    %cst_14 = arith.constant 0.000000e+00 : f32
    %21 = vector.broadcast %cst_13 : f32 to vector<32x32xf32>
    %22 = vector.broadcast %cst_14 : f32 to vector<32x32xf32>
    %23 = arith.select %20, %21, %22 : vector<32x32xi1>, vector<32x32xf32>
    %24 = arith.addf %16, %23 : vector<32x32xf32>
    %c0_15 = arith.constant 0 : index
    %c0_16 = arith.constant 0 : index
    %25 = vector.load %arg3[%c0_15, %c0_16] : memref<32x32xf32, #tpu.memory_space<vmem>>, vector<32x32xf32>
    %cst_17 = arith.constant 0.000000e+00 : f32
    %26 = vector.broadcast %cst_17 : f32 to vector<32x32xf32>
    %27 = arith.cmpf oge, %25, %26 : vector<32x32xf32>
    %cst_18 = arith.constant 0.000000e+00 : f32
    %28 = vector.broadcast %cst_18 : f32 to vector<32x32xf32>
    %29 = arith.subf %28, %24 : vector<32x32xf32>
    %30 = arith.select %27, %24, %29 : vector<32x32xi1>, vector<32x32xf32>
    %31 = arith.truncf %30 : vector<32x32xf32> to vector<32x32xbf16>
    %c0_19 = arith.constant 0 : index
    %c0_20 = arith.constant 0 : index
    %32 = vector.load %arg4[%c0_19, %c0_20] : memref<32x32xbf16, #tpu.memory_space<vmem>>, vector<32x32xbf16>
    tpu.vector_store %arg4[%c0_19, %c0_20], %31 {strides = array<i32>} : memref<32x32xbf16, #tpu.memory_space<vmem>>, vector<32x32xbf16>,
    return
  }
  func.func @transform_0(%arg0: i32, %arg1: i32) -> (i32, i32, i32) {
    %c0_i32 = arith.constant 0 : i32
    %c0_i32_0 = arith.constant 0 : i32
    return %c0_i32, %arg0, %arg1 : i32, i32, i32
  }
  func.func @transform_1(%arg0: i32, %arg1: i32) -> (i32, i32) {
    %c0_i32 = arith.constant 0 : i32
    return %arg0, %arg1 : i32, i32
  }
  func.func @transform_2(%arg0: i32, %arg1: i32) -> (i32, i32) {
    %c0_i32 = arith.constant 0 : i32
    return %arg0, %arg1 : i32, i32
  }
}

</mosaic_0001>

<bundles_post_ra>
// kernel: tpu_custom_call.1
= control target key start
LH: loop header
LB: loop body
LE: loop exit
PB: predicated region body
PF: predicated region fallthrough
CT: control target
= control target key end

     0   :  { %7 = vsyncpa [#allocation3], 0  ;;  %s296_s0 = inlined_call_operand.hbm [shape: f32[3,32,32], index: 0, kind: input, shape index: {}]   ;;  %s297_s1 = inlined_call_operand.hbm [shape: f32[32,32], index: 1, kind: input, shape index: {}]   ;;  %s298_s2 = inlined_call_operand.hbm [shape: bf16[32,32], index: 2, kind: output, shape index: {}]  }
   0x1   :  { %8 = vsyncpa [#allocation6], 0 }
   0x2   :  { %9 = vsyncpa [#allocation4], 0  ;;  %s233_s9 = smov [#allocation2]   ;;  %s161_s13 = scalar_lea.hbm %s296_s0, 1536 }
   0x3   :  { %s15_s10 = sshll.u32 %s233_s9, 4  ;;  %p162_p0 = scmp.ne.s32.totalorder %s296_s0, %s161_s13  ;;  %s16_s10 = int_to_ptr.vmem [resolvable:$true] %s15_s10 }
   0x4   :  { %p165_p1 = scmp.lt.u32.totalorder %s161_s13, %s296_s0 }
   0x6   :  { %p167_p2 = pnand %p165_p1, %p162_p0 }
   0x8   :  { %170 = shalt.err (!%p167_p2)
}
   0x9   :  { %s171_s18 = scalar_lea.vmem %s16_s10, 1536  ;;  %p176_p4 = scmp.lt.s32.totalorder %s16_s10, %s16_s10 }
   0xa   :  { %p172_p3 = scmp.ne.s32.totalorder %s16_s10, %s171_s18  ;;  %p177_p5 = scmp.lt.s32.totalorder %s171_s18, %s171_s18 }
   0xc   :  { %p178_p6 = por %p177_p5, %p176_p4 }
   0xe   :  { %p179_p7 = pnand %p178_p6, %p172_p3 }
  0x10   :  { %182 = shalt.err (!%p179_p7)
}
  0x11   :  { %s234_s19 = smov 128   ;;  %s235_s20 = smov 8  }
  0x12   :  { %21 = dma.hbm_to_vmem [thread:$0]  %s296_s0, 1536, %s16_s10, [#allocation3], %s234_s19, %s234_s19, %s235_s20  }
  0x13   :  { %s236_s23 = smov [#allocation5]   ;;  %s183_s27 = scalar_lea.hbm %s297_s1, 512 }
  0x14   :  { %s27_s24 = sshll.u32 %s236_s23, 4  ;;  %p184_p8 = scmp.ne.s32.totalorder %s297_s1, %s183_s27  ;;  %s28_s24 = int_to_ptr.vmem [resolvable:$true] %s27_s24 }
  0x15   :  { %p187_p9 = scmp.lt.u32.totalorder %s183_s27, %s297_s1 }
  0x17   :  { %p189_p10 = pnand %p187_p9, %p184_p8 }
  0x19   :  { %192 = shalt.err (!%p189_p10)
}
  0x1a   :  { %s193_s4 = scalar_lea.vmem %s28_s24, 512  ;;  %p198_p12 = scmp.lt.s32.totalorder %s28_s24, %s28_s24 }
  0x1b   :  { %p194_p11 = scmp.ne.s32.totalorder %s28_s24, %s193_s4  ;;  %p199_p13 = scmp.lt.s32.totalorder %s193_s4, %s193_s4 }
  0x1d   :  { %p200_p0 = por %p199_p13, %p198_p12 }
  0x1f   :  { %p201_p1 = pnand %p200_p0, %p194_p11 }
  0x21   :  { %204 = shalt.err (!%p201_p1)
}
  0x22   :  { %33 = dma.hbm_to_vmem [thread:$0]  %s297_s1, 512, %s28_s24, [#allocation6], %s234_s19, %s234_s19, %s235_s20  }
  0x23   :  { %227 = dma.done.wait [#allocation3], 1536  }
  0x24   :  { %228 = vsyncadd [#allocation3], 4294965760 }
  0x25   :  { %229 = dma.done.wait [#allocation6], 512  }
  0x26   :  { %230 = vsyncadd [#allocation6], 4294966784  ;;  %v40_v0 = vld [vmem:[#allocation2] sm:$0xff]  ;;  %v41_v3 = vld [vmem:[#allocation2 + $0x8] sm:$0xff]  ;;  %v237_v5 = vmov 0.0   ;;  %vm122_vm6 = vcmask 257024  }
  0x27   :  { %v57_v1 = vld [vmem:[#allocation2 + $0x20] sm:$0xff]  ;;  %vm44_vm0 = vcmp.ge.f32.partialorder %v40_v0, 0.0  ;;  %v58_v4 = vld [vmem:[#allocation2 + $0x28] sm:$0xff]  ;;  %vm45_vm3 = vcmp.ge.f32.partialorder %v41_v3, 0.0  ;;  %v42_v12 = vld [vmem:[#allocation2 + $0x10] sm:$0xff]  ;;  %s238_s1 = smov [#allocation7]  }
  0x28   :  { %v74_v2 = vld [vmem:[#allocation2 + $0x40] sm:$0xff]  ;;  %vm61_vm1 = vcmp.ge.f32.partialorder %v57_v1, 0.0  ;;  %v48_v6 = vsel %vm44_vm0, 0.5, %v237_v5  ;;  %v75_v10 = vld [vmem:[#allocation2 + $0x48] sm:$0xff]  ;;  %vm62_vm4 = vcmp.ge.f32.partialorder %v58_v4, 0.0  ;;  %v59_v13 = vld [vmem:[#allocation2 + $0x30] sm:$0xff] }
  0x29   :  { %vm78_vm2 = vcmp.ge.f32.partialorder %v74_v2, 0.0  ;;  %v65_v7 = vsel %vm61_vm1, 0.25, %v237_v5  ;;  %v90_v9 = vld [vmem:[#allocation5] sm:$0xff]  ;;  %vm79_vm5 = vcmp.ge.f32.partialorder %v75_v10, 0.0  ;;  %v76_v14 = vld [vmem:[#allocation2 + $0x50] sm:$0xff]  ;;  %v49_v15 = vsel %vm45_vm3, 0.5, %v237_v5 }
  0x2a   :  { %v82_v8 = vsel %vm78_vm2, 0.125, %v237_v5  ;;  %v69_v11 = vadd.f32 %v65_v7, %v48_v6  ;;  %v66_v16 = vsel %vm62_vm4, 0.25, %v237_v5  ;;  %v83_v17 = vsel %vm79_vm5, 0.125, %v237_v5  ;;  %v91_v18 = vld [vmem:[#allocation5 + $0x8] sm:$0xff]  ;;  %v43_v21 = vld [vmem:[#allocation2 + $0x18] sm:$0xff]  ;;  %v92_v30 = vld [vmem:[#allocation5 + $0x10] sm:$0xff] }
  0x2b   :  { %v70_v20 = vadd.f32 %v66_v16, %v49_v15  ;;  %vm46_vm7 = vcmp.ge.f32.partialorder %v42_v12, 0.0  ;;  %vm63_vm8 = vcmp.ge.f32.partialorder %v59_v13, 0.0  ;;  %v60_v22 = vld [vmem:[#allocation2 + $0x38] sm:$0xff]  ;;  %vm94_vm9 = vcmp.ge.f32.partialorder %v90_v9, 0.0  ;;  %s132_s6 = sshll.u32 %s238_s1, 4  ;;  %s133_s6 = int_to_ptr.vmem [resolvable:$true] %s132_s6 }
  0x2c   :  { %v86_v19 = vadd.f32 %v82_v8, %v69_v11  ;;  %v77_v23 = vld [vmem:[#allocation2 + $0x58] sm:$0xff]  ;;  %v50_v24 = vsel %vm46_vm7, 0.5, %v237_v5  ;;  %v67_v25 = vsel %vm63_vm8, 0.25, %v237_v5  ;;  %vm80_vm10 = vcmp.ge.f32.partialorder %v76_v14, 0.0  ;;  %s205_s7 = scalar_lea.vmem %s133_s6, 256  ;;  %p210_p3 = scmp.lt.s32.totalorder %s133_s6, %s133_s6 }
  0x2d   :  { %v87_v27 = vadd.f32 %v83_v17, %v70_v20  ;;  %v71_v28 = vadd.f32 %v67_v25, %v50_v24  ;;  %v84_v29 = vsel %vm80_vm10, 0.125, %v237_v5  ;;  %vm95_vm11 = vcmp.ge.f32.partialorder %v91_v18, 0.0  ;;  %v93_v41 = vld [vmem:[#allocation5 + $0x18] sm:$0xff]  ;;  %p206_p2 = scmp.ne.s32.totalorder %s133_s6, %s205_s7  ;;  %p211_p4 = scmp.lt.s32.totalorder %s205_s7, %s205_s7 }
  0x2e   :  { %v98_v26 = vsub.f32 0.0, %v86_v19  ;;  %vm47_vm12 = vcmp.ge.f32.partialorder %v43_v21, 0.0  ;;  %vm64_vm13 = vcmp.ge.f32.partialorder %v60_v22, 0.0  ;;  %vm81_vm14 = vcmp.ge.f32.partialorder %v77_v23, 0.0 }
  0x2f   :  { %v99_v32 = vsub.f32 0.0, %v87_v27  ;;  %v88_v33 = vadd.f32 %v84_v29, %v71_v28  ;;  %v51_v34 = vsel %vm47_vm12, 0.5, %v237_v5  ;;  %vm96_vm15 = vcmp.ge.f32.partialorder %v92_v30, 0.0  ;;  %p212_p5 = por %p211_p4, %p210_p3 }
  0x30   :  { %v102_v31 = vsel %vm94_vm9, %v86_v19, %v98_v26  ;;  %v68_v36 = vsel %vm64_vm13, 0.25, %v237_v5  ;;  %v85_v37 = vsel %vm81_vm14, 0.125, %v237_v5  ;;  %vm97_vm0 = vcmp.ge.f32.partialorder %v93_v41, 0.0 }
  0x31   :  { %v149_v35 = vpack.c.bf16 %v102_v31, %v102_v31  ;;  %v103_v38 = vsel %vm95_vm11, %v87_v27, %v99_v32  ;;  %v100_v39 = vsub.f32 0.0, %v88_v33  ;;  %v72_v40 = vadd.f32 %v68_v36, %v51_v34  ;;  %p213_p6 = pnand %p212_p5, %p206_p2 }
  0x32   :  { %v150_v42 = vpack.c.bf16 %v103_v38, %v103_v38 }
  0x33   :  { %123 = vst.msk [vmem:[#allocation7] sm:$0xf] %vm122_vm6, %v149_v35  ;;  %v104_v43 = vsel %vm96_vm15, %v88_v33, %v100_v39  ;;  %v89_v44 = vadd.f32 %v85_v37, %v72_v40 }
  0x34   :  { %124 = vst.msk [vmem:[#allocation7 + $0x4] sm:$0xf] %vm122_vm6, %v150_v42  ;;  %v151_v45 = vpack.c.bf16 %v104_v43, %v104_v43 }
  0x35   :  { %v101_v46 = vsub.f32 0.0, %v89_v44 }
  0x36   :  { %125 = vst.msk [vmem:[#allocation7 + $0x8] sm:$0xf] %vm122_vm6, %v151_v45 }
  0x37   :  { %v105_v47 = vsel %vm97_vm0, %v89_v44, %v101_v46 }
  0x38   :  { %v152_v48 = vpack.c.bf16 %v105_v47, %v105_v47 }
  0x3a   :  { %126 = vst.msk [vmem:[#allocation7 + $0xc] sm:$0xf] %vm122_vm6, %v152_v48 }
  0x3b   :  { %216 = shalt.err (!%p213_p6)
}
  0x3c   :  { %s217_s10 = scalar_lea.hbm %s298_s2, 256 }
  0x3d   :  { %p218_p7 = scmp.ne.s32.totalorder %s298_s2, %s217_s10  ;;  %p221_p8 = scmp.lt.u32.totalorder %s217_s10, %s298_s2 }
  0x3f   :  { %p223_p9 = pnand %p221_p8, %p218_p7 }
  0x41   :  { %226 = shalt.err (!%p223_p9)
}
  0x42   :  { %s239_s15 = smov 64   ;;  %s240_s16 = smov 4  }
  0x43   :  { %138 = dma.vmem_to_hbm [thread:$0]  %s133_s6, 256, %s298_s2, [#allocation4], %s239_s15, %s239_s15, %s240_s16  }
  0x44   :  { %231 = dma.done.wait [#allocation4], 256  }
  0x45   :  { %232 = vsyncadd [#allocation4], 4294967040 }
  0x46   :  { %142 = vsyncpa [#allocation3], 1 }
  0x47   :  { %143 = vsyncpa [#allocation6], 1 }
  0x48   :  { %144 = vsyncpa [#allocation4], 1 }

</bundles_post_ra>
